<compile_context>
chip_gen: v7x
topology: tpu7x:2x2x1
jax: 0.10.0
libtpu: 0.0.40
codegen_flags: <defaults>
</compile_context>

<pallas_src>
import jax
import jax.numpy as jnp
from jax.experimental import pallas as pl
from jax.experimental.pallas import tpu as pltpu


def _swish_kernel(x_ref, o_ref):
    x = x_ref[...]
    if x.dtype == jnp.bfloat16:
        # bf16-native VPU/EUP path (v6e/v7x); Mosaic upcasts internally on v5e.
        o_ref[...] = (x * jax.nn.sigmoid(x)).astype(o_ref.dtype)
    else:
        xf = x.astype(jnp.float32)
        o_ref[...] = (xf * jax.nn.sigmoid(xf)).astype(o_ref.dtype)


def _round_up(n: int, m: int) -> int:
    return ((n + m - 1) // m) * m


def _pick_block_bytes() -> int:
    """Per-generation default block size.

    v7x (~3.2 TB/s/TC): a 1 MiB block streams in ~0.6 us, exposing the ~0.35 us
    grid-step overhead -> 4 MiB.  v6e: 2 MiB.  v5e / unknown: 1 MiB (DMA at
    820 GB/s already hides the step overhead; fits the 16 MiB scoped default).
    """
    kind = ""
    try:
        kind = jax.devices()[0].device_kind.lower()
    except Exception:
        pass
    if "v7" in kind:
        return 4 << 20
    if "v6" in kind:
        return 2 << 20
    return 1 << 20


def _swish_aligned(x_flat: jax.Array, block_bytes: int) -> jax.Array:
    """Pallas streaming swish on a flat array whose length is a multiple of 128."""
    total = x_flat.shape[0]
    dtype = x_flat.dtype
    itemsize = jnp.dtype(dtype).itemsize
    # Native packed sublane multiple: 8 (f32), 16 (bf16/f16), 32 (int8/fp8).
    sub_mult = max(8, 32 // itemsize)

    # Widest lane count (multiple of 128) that divides the flat length while
    # keeping at least `sub_mult` rows -> fewer, longer DMA descriptors,
    # always-unmasked stores.
    lanes = 128
    for cand in (512, 256):
        if total % cand == 0 and total // cand >= sub_mult:
            lanes = cand
            break

    rows = total // lanes
    x2d = x_flat.reshape(rows, lanes)

    max_rows = max(sub_mult, (block_bytes // (lanes * itemsize)) // sub_mult * sub_mult)
    if rows <= max_rows:
        if rows > sub_mult:
            # Whole array fits one block; split into >=2 blocks so the
            # ("parallel",) grid axis feeds both v7x TensorCores.
            tile_rows = _round_up((rows + 1) // 2, sub_mult)
        else:
            tile_rows = rows  # single block == full array (always legal)
    else:
        tile_rows = max_rows

    grid = (pl.cdiv(rows, tile_rows),)  # Pallas masks the ragged last block

    # Double-buffered in+out must fit scoped VMEM on every generation.
    dbuf_bytes = 2 * 2 * tile_rows * lanes * itemsize
    vmem_limit = min(48 << 20, max(32 << 20, dbuf_bytes + (8 << 20)))

    out2d = pl.pallas_call(
        _swish_kernel,
        out_shape=jax.ShapeDtypeStruct((rows, lanes), dtype),
        grid_spec=pltpu.PrefetchScalarGridSpec(
            num_scalar_prefetch=0,
            grid=grid,
            in_specs=[pl.BlockSpec((tile_rows, lanes), lambda i: (i, 0))],
            out_specs=pl.BlockSpec((tile_rows, lanes), lambda i: (i, 0)),
        ),
        compiler_params=pltpu.CompilerParams(
            dimension_semantics=("parallel",),
            vmem_limit_bytes=vmem_limit,
        ),
    )(x2d)
    return out2d.reshape(-1)


def swish(x: jax.Array, *, block_bytes: int | None = None) -> jax.Array:
    """Elementwise x * sigmoid(x) for any shape / float dtype (e.g. NCHW)."""
    orig_shape = x.shape
    dtype = x.dtype
    total = x.size
    if total == 0:
        return x
    if block_bytes is None:
        block_bytes = _pick_block_bytes()

    x_flat = jnp.ravel(x)

    LANE = 128
    main = (total // LANE) * LANE
    if main == 0:
        # Fewer than 128 elements: a single fused XLA op is already optimal.
        return (x_flat * jax.nn.sigmoid(x_flat)).astype(dtype).reshape(orig_shape)

    if main == total:
        # Common (NCHW) case: no pad, no slice, no extra HBM passes.
        out_flat = _swish_aligned(x_flat, block_bytes)
    else:
        # Misaligned: Pallas on the 128-aligned prefix, tiny XLA tail, stitch.
        head_out = _swish_aligned(x_flat[:main], block_bytes)
        tail = x_flat[main:]
        tail_out = (tail * jax.nn.sigmoid(tail)).astype(dtype)
        out_flat = jnp.concatenate([head_out, tail_out])

    return out_flat.reshape(orig_shape)


class Swish:
    """Drop-in functional equivalent of the PyTorch Swish module."""

    def __call__(self, x: jax.Array) -> jax.Array:
        return swish(x)


if __name__ == "__main__":
    key = jax.random.PRNGKey(0)

    # NCHW input, matching the PyTorch module's typical usage.
    x = jax.random.normal(key, (2, 4, 16, 16), dtype=jnp.float32)
    y = Swish()(x)
    jax.block_until_ready(y)
    y_ref = x * jax.nn.sigmoid(x)
    assert y.shape == x.shape and y.dtype == x.dtype
    assert jnp.allclose(y, y_ref, atol=1e-6, rtol=1e-6)

    # Non-128-aligned total (135 elems): Pallas prefix + tiny XLA tail.
    x2 = jax.random.normal(jax.random.PRNGKey(1), (3, 5, 9), dtype=jnp.float32)
    y2 = swish(x2)
    jax.block_until_ready(y2)
    assert jnp.allclose(y2, x2 * jax.nn.sigmoid(x2), atol=1e-6, rtol=1e-6)

    # Tiny (< 128 elems): pure-XLA fallback path.
    x3 = jax.random.normal(jax.random.PRNGKey(2), (3, 5, 7), dtype=jnp.float32)
    y3 = swish(x3)
    jax.block_until_ready(y3)
    assert jnp.allclose(y3, x3 * jax.nn.sigmoid(x3), atol=1e-6, rtol=1e-6)

    # bf16 path with a multi-step grid (exercises the >=2-block / megacore split).
    x4 = jax.random.normal(jax.random.PRNGKey(3), (4, 8, 32, 32), dtype=jnp.bfloat16)
    y4 = swish(x4)
    jax.block_until_ready(y4)
    x4f = x4.astype(jnp.float32)
    y4_ref = (x4f * jax.nn.sigmoid(x4f)).astype(jnp.bfloat16)
    assert y4.dtype == jnp.bfloat16 and y4.shape == x4.shape
    assert jnp.allclose(
        y4.astype(jnp.float32), y4_ref.astype(jnp.float32), atol=3e-2, rtol=3e-2
    )

    print("KERNEL_OK")
</pallas_src>

<mosaic_0001>
module attributes {stable_mosaic.version = 11 : i64} {
  func.func @_swish_kernel(%arg0: i32, %arg1: memref<8x256xf32, #tpu.memory_space<vmem>>, %arg2: memref<8x256xf32, #tpu.memory_space<vmem>>) attributes {dimension_semantics = [#tpu.dimension_semantics<parallel>], iteration_bounds = array<i64: 1>, scalar_prefetch = 0 : i64, scratch_operands = 0 : i64, tpu.core_type = #tpu.core_type<tc>, window_params = [{transform_indices = @transform_0, window_bounds = array<i64: 8, 256>}, {transform_indices = @transform_1, window_bounds = array<i64: 8, 256>}]} {
    %c0 = arith.constant 0 : index
    %c0_0 = arith.constant 0 : index
    %0 = vector.load %arg1[%c0, %c0_0] : memref<8x256xf32, #tpu.memory_space<vmem>>, vector<8x256xf32>
    %1 = arith.negf %0 : vector<8x256xf32>
    %2 = math.exp %1 : vector<8x256xf32>
    %cst = arith.constant 1.000000e+00 : f32
    %3 = vector.broadcast %cst : f32 to vector<8x256xf32>
    %4 = arith.addf %3, %2 : vector<8x256xf32>
    %5 = arith.divf %3, %4 : vector<8x256xf32>
    %6 = arith.mulf %0, %5 : vector<8x256xf32>
    %c0_1 = arith.constant 0 : index
    %c0_2 = arith.constant 0 : index
    %7 = vector.load %arg2[%c0_1, %c0_2] : memref<8x256xf32, #tpu.memory_space<vmem>>, vector<8x256xf32>
    tpu.vector_store %arg2[%c0_1, %c0_2], %6 {strides = array<i32>} : memref<8x256xf32, #tpu.memory_space<vmem>>, vector<8x256xf32>,
    return
  }
  func.func @transform_0(%arg0: i32) -> (i32, i32) {
    %c0_i32 = arith.constant 0 : i32
    %c0_i32_0 = arith.constant 0 : i32
    return %arg0, %c0_i32 : i32, i32
  }
  func.func @transform_1(%arg0: i32) -> (i32, i32) {
    %c0_i32 = arith.constant 0 : i32
    %c0_i32_0 = arith.constant 0 : i32
    return %arg0, %c0_i32 : i32, i32
  }
}

</mosaic_0001>

<bundles_post_ra>
// kernel: tpu_custom_call.1
= control target key start
LH: loop header
LB: loop body
LE: loop exit
PB: predicated region body
PF: predicated region fallthrough
CT: control target
= control target key end

     0   :  { %6 = vsyncpa [#allocation3], 0  ;;  %s150_s0 = inlined_call_operand.hbm [shape: f32[8,256], index: 0, kind: input, shape index: {}]   ;;  %s151_s1 = inlined_call_operand.hbm [shape: f32[8,256], index: 1, kind: output, shape index: {}]  }
   0x1   :  { %7 = vsyncpa [#allocation4], 0  ;;  %s114_s6 = smov [#allocation2]   ;;  %s66_s10 = scalar_lea.hbm %s150_s0, 256 }
   0x2   :  { %s14_s7 = sshll.u32 %s114_s6, 4  ;;  %p67_p0 = scmp.ne.s32.totalorder %s150_s0, %s66_s10  ;;  %s15_s7 = int_to_ptr.vmem [resolvable:$true] %s14_s7 }
   0x3   :  { %p70_p1 = scmp.lt.u32.totalorder %s66_s10, %s150_s0 }
   0x5   :  { %p72_p2 = pnand %p70_p1, %p67_p0 }
   0x7   :  { %75 = shalt.err (!%p72_p2)
}
   0x8   :  { %s76_s15 = scalar_lea.vmem %s15_s7, 256  ;;  %p81_p4 = scmp.lt.s32.totalorder %s15_s7, %s15_s7 }
   0x9   :  { %p77_p3 = scmp.ne.s32.totalorder %s15_s7, %s76_s15  ;;  %p82_p5 = scmp.lt.s32.totalorder %s76_s15, %s76_s15 }
   0xb   :  { %p83_p6 = por %p82_p5, %p81_p4 }
   0xd   :  { %p84_p7 = pnand %p83_p6, %p77_p3 }
   0xf   :  { %87 = shalt.err (!%p84_p7)
}
  0x10   :  { %17 = dma.hbm_to_vmem [thread:$0]  %s150_s0, 256, %s15_s7, [#allocation3]  }
  0x11   :  { %110 = dma.done.wait [#allocation3], 256  }
  0x12   :  { %111 = vsyncadd [#allocation3], 4294967040  ;;  %v21_v0 = vld [vmem:[#allocation2] sm:$0xff]  ;;  %v22_v1 = vld [vmem:[#allocation2 + $0x8] sm:$0xff]  ;;  %s115_s18 = smov [#allocation5]  }
  0x13   :  { %v54_v2 = vmul.f32 -1.442695, %v21_v0  ;;  %v55_v3 = vmul.f32 -1.442695, %v22_v1  ;;  %s45_s19 = sshll.u32 %s115_s18, 4  ;;  %s46_s19 = int_to_ptr.vmem [resolvable:$true] %s45_s19 }
  0x14   :  { %s88_s0 = scalar_lea.vmem %s46_s19, 256  ;;  %p93_p9 = scmp.lt.s32.totalorder %s46_s19, %s46_s19 }
  0x15   :  { %58 = vpow2.f32 %v54_v2  ;;  %p89_p8 = scmp.ne.s32.totalorder %s46_s19, %s88_s0  ;;  %p94_p10 = scmp.lt.s32.totalorder %s88_s0, %s88_s0 }
  0x16   :  { %60 = vpow2.f32 %v55_v3 }
  0x17   :  { %p95_p11 = por %p94_p10, %p93_p9 }
  0x19   :  { %p96_p12 = pnand %p95_p11, %p89_p8 }
  0x1f   :  { %v59_v4 = vpop.eup %58 }
  0x20   :  { %v61_v5 = vpop.eup %60  ;;  %v29_v6 = vadd.f32 1.0, %v59_v4 }
  0x21   :  { %v30_v7 = vadd.f32 1.0, %v61_v5 }
  0x22   :  { %62 = vrcp.f32 %v29_v6 }
  0x23   :  { %64 = vrcp.f32 %v30_v7 }
  0x2c   :  { %v63_v8 = vpop.eup %62 }
  0x2d   :  { %v65_v9 = vpop.eup %64  ;;  %v35_v10 = vmul.f32 %v63_v8, %v21_v0 }
  0x2e   :  { %v36_v11 = vmul.f32 %v65_v9, %v22_v1 }
  0x2f   :  { %37 = vst [vmem:[#allocation5] sm:$0xff] %v35_v10 }
  0x30   :  { %38 = vst [vmem:[#allocation5 + $0x8] sm:$0xff] %v36_v11 }
  0x31   :  { %99 = shalt.err (!%p96_p12)
}
  0x32   :  { %s100_s22 = scalar_lea.hbm %s151_s1, 256 }
  0x33   :  { %p101_p13 = scmp.ne.s32.totalorder %s151_s1, %s100_s22  ;;  %p104_p0 = scmp.lt.u32.totalorder %s100_s22, %s151_s1 }
  0x35   :  { %p106_p1 = pnand %p104_p0, %p101_p13 }
  0x37   :  { %109 = shalt.err (!%p106_p1)
}
  0x38   :  { %48 = dma.vmem_to_hbm [thread:$0]  %s46_s19, 256, %s151_s1, [#allocation4]  }
  0x39   :  { %112 = dma.done.wait [#allocation4], 256  }
  0x3a   :  { %113 = vsyncadd [#allocation4], 4294967040 }
  0x3b   :  { %52 = vsyncpa [#allocation3], 1 }
  0x3c   :  { %53 = vsyncpa [#allocation4], 1 }

</bundles_post_ra>
